<compile_context>
chip_gen: v5e
topology: v5e:2x2
jax: 0.10.0
libtpu: 0.0.40
codegen_flags: <defaults>
</compile_context>

<pallas_src>
import math

import jax
import jax.numpy as jnp
from jax import lax
from jax.experimental import pallas as pl
from jax.experimental.pallas import tpu as pltpu

BN = 32  # destination-node rows per grid step


def _round_up(x, m):
    return ((x + m - 1) // m) * m


# ----------------------- Kernel A: fc linear (tiled MXU) ---------------------
def _matmul_kernel(a_ref, b_ref, o_ref, acc_ref):
    @pl.when(pl.program_id(2) == 0)
    def _():
        acc_ref[...] = jnp.zeros_like(acc_ref)

    acc_ref[...] += jnp.dot(a_ref[...], b_ref[...],
                            preferred_element_type=jnp.float32)

    @pl.when(pl.program_id(2) == pl.num_programs(2) - 1)
    def _():
        o_ref[...] = acc_ref[...].astype(o_ref.dtype)


def fc_linear(x, w_t):
    """x: (M, Cin) @ w_t: (Cin, Cout) -> (M, Cout), f32."""
    m, kc = x.shape
    _, n = w_t.shape
    tm = 256 if m >= 256 else _round_up(m, 8)
    tn = 256 if n >= 256 else _round_up(n, 128)
    tk = 256 if kc >= 256 else _round_up(kc, 128)
    mp, kp, np_ = _round_up(m, tm), _round_up(kc, tk), _round_up(n, tn)
    # f32 operands keep exact parity with the PyTorch module (bf16 MXU operands
    # would be faster on v6e/v7x but change numerics).
    xp = jnp.pad(x.astype(jnp.float32), ((0, mp - m), (0, kp - kc)))
    wp = jnp.pad(w_t.astype(jnp.float32), ((0, kp - kc), (0, np_ - n)))

    out = pl.pallas_call(
        _matmul_kernel,
        out_shape=jax.ShapeDtypeStruct((mp, np_), jnp.float32),
        grid_spec=pltpu.PrefetchScalarGridSpec(
            num_scalar_prefetch=0,
            grid=(mp // tm, np_ // tn, kp // tk),
            in_specs=[pl.BlockSpec((tm, tk), lambda i, j, k: (i, k)),
                      pl.BlockSpec((tk, tn), lambda i, j, k: (k, j))],
            out_specs=pl.BlockSpec((tm, tn), lambda i, j, k: (i, j)),
            scratch_shapes=[pltpu.VMEM((tm, tn), jnp.float32)]),
        compiler_params=pltpu.CompilerParams(
            dimension_semantics=("parallel", "parallel", "arbitrary")),
    )(xp, wp)
    return out[:m, :n]


# --------- Kernel B: per-edge gaussian weights, expanded to (E, K*F) ---------
# ||(p - mu_k) * s_k||^2 = sum_d p_d^2 s2[k,d] - 2 p_d s2[k,d] mu[k,d] + mu^2 s2
# Computed on the VPU with the (tiny) d loop unrolled; output is emitted in the
# expanded layout w_exp[e, k*F + f] = w[e, k] so Kernel C can use pure FMAs.
def _make_edge_gauss_kernel(d_dim):
    def kernel(p_ref, a_ref, b_ref, c_ref, w_ref):
        q = c_ref[...]                                   # (1, KF), broadcasts
        for d in range(d_dim):
            pd = p_ref[:, d:d + 1]                       # (ET, 1)
            q = q + (pd * pd) * a_ref[d:d + 1, :] + pd * b_ref[d:d + 1, :]
        w_ref[...] = jnp.exp(-0.5 * q)                   # EUP
    return kernel


def edge_gaussian_expanded(pseudo, mu, inv_sigma, out_feats):
    e, d = pseudo.shape
    k = mu.shape[0]
    kf = k * out_feats
    # tiny parameter preprocessing (K*D elements) is JAX glue
    s2 = (inv_sigma * inv_sigma).astype(jnp.float32)                 # (K, D)
    a_exp = jnp.repeat(s2.T, out_feats, axis=1)                      # (D, KF)
    b_exp = jnp.repeat((-2.0 * s2 * mu).T, out_feats, axis=1)        # (D, KF)
    c_exp = jnp.repeat(jnp.sum(mu * mu * s2, axis=1)[None, :],
                       out_feats, axis=1)                            # (1, KF)

    et = 512 if e >= 512 else _round_up(e, 8)
    e_pad = _round_up(e, et)
    pseudo_p = jnp.pad(pseudo.astype(jnp.float32), ((0, e_pad - e), (0, 0)))

    w_exp = pl.pallas_call(
        _make_edge_gauss_kernel(d),
        out_shape=jax.ShapeDtypeStruct((e_pad, kf), jnp.float32),
        grid_spec=pltpu.PrefetchScalarGridSpec(
            num_scalar_prefetch=0,
            grid=(e_pad // et,),
            in_specs=[
                pl.BlockSpec((et, d), lambda i: (i, 0)),
                pl.BlockSpec((d, kf), lambda i: (0, 0)),
                pl.BlockSpec((d, kf), lambda i: (0, 0)),
                pl.BlockSpec((1, kf), lambda i: (0, 0)),
            ],
            out_specs=pl.BlockSpec((et, kf), lambda i: (i, 0)),
        ),
        compiler_params=pltpu.CompilerParams(
            dimension_semantics=("parallel",)),
    )(pseudo_p, a_exp, b_exp, c_exp)
    return w_exp


# ------- Kernel C: CSR gather + gaussian-weighted aggregation (+bias) --------
def _make_aggregate_kernel(k_kernels, out_feats):
    kf = k_kernels * out_feats

    def kernel(rowptr_ref, colind_ref, wexp_ref, nf_ref, bias_ref,
               out_ref, acc_ref):
        blk = pl.program_id(0)

        def row_body(j, carry):
            node = blk * BN + j
            start = rowptr_ref[node]
            stop = rowptr_ref[node + 1]

            def edge_body(e, acc):
                src = colind_ref[e]                       # SMEM scalar
                w_row = wexp_ref[pl.ds(e, 1), :]          # (1, KF)
                nf_row = nf_ref[pl.ds(src, 1), :]         # (1, KF) contiguous
                return acc + w_row * nf_row               # VPU FMA, no MXU

            acc = lax.fori_loop(start, stop, edge_body,
                                jnp.zeros((1, kf), jnp.float32))
            # reduce the K mixture segments once per destination row
            row = acc[:, 0:out_feats]
            for kk in range(1, k_kernels):
                row = row + acc[:, kk * out_feats:(kk + 1) * out_feats]
            acc_ref[pl.ds(j, 1), :] = row
            return carry

        lax.fori_loop(0, BN, row_body, 0)
        out_ref[...] = acc_ref[...] + bias_ref[...]       # one block store/bias

    return kernel


def gmm_aggregate(rowptr, colind, w_exp, nf_flat, bias_2d, n_nodes,
                  k_kernels, out_feats):
    e_pad, kf = w_exp.shape
    n_pad = _round_up(n_nodes, BN)
    pad = n_pad - n_nodes
    rowptr_i = rowptr.astype(jnp.int32)
    # padded destination rows get start == stop == E -> zero-trip edge loop
    rowptr_p = jnp.concatenate([rowptr_i, jnp.repeat(rowptr_i[-1:], pad)])

    # TODO(synk): for very large graphs, colind should be DMA'd per row-tile
    # (keyed by rowptr) instead of living wholly in SMEM, and w_exp / nf_flat
    # should move to memory_space=pl.ANY with a manual gather to fit VMEM.
    out = pl.pallas_call(
        _make_aggregate_kernel(k_kernels, out_feats),
        out_shape=jax.ShapeDtypeStruct((n_pad, out_feats), jnp.float32),
        grid_spec=pltpu.PrefetchScalarGridSpec(
            num_scalar_prefetch=2,
            grid=(n_pad // BN,),
            in_specs=[
                pl.BlockSpec((e_pad, kf), lambda i, rp, ci: (0, 0)),
                pl.BlockSpec(nf_flat.shape, lambda i, rp, ci: (0, 0)),
                pl.BlockSpec((1, out_feats), lambda i, rp, ci: (0, 0)),
            ],
            out_specs=pl.BlockSpec((BN, out_feats), lambda i, rp, ci: (i, 0)),
            scratch_shapes=[pltpu.VMEM((BN, out_feats), jnp.float32)],
        ),
        compiler_params=pltpu.CompilerParams(
            dimension_semantics=("parallel",)),
    )(rowptr_p, colind.astype(jnp.int32), w_exp, nf_flat, bias_2d)
    return out[:n_nodes]


# ------------------------------ Module wrapper --------------------------------
class GMMConvPallas:
    def __init__(self, in_feats, out_feats, dim, n_kernels, key,
                 aggregator_type="sum", residual=False, bias=True):
        assert aggregator_type == "sum"
        self.in_feats, self.out_feats = in_feats, out_feats
        self.dim, self.n_kernels = dim, n_kernels
        k_fc, k_mu, k_res = jax.random.split(key, 3)
        gain = math.sqrt(2.0)                          # init.calculate_gain('relu')
        std = gain * math.sqrt(2.0 / (in_feats + n_kernels * out_feats))
        self.fc_weight = (std * jax.random.normal(
            k_fc, (n_kernels * out_feats, in_feats))).astype(jnp.float32)
        self.mu = (0.1 * jax.random.normal(k_mu, (n_kernels, dim))).astype(jnp.float32)
        self.inv_sigma = jnp.ones((n_kernels, dim), jnp.float32)
        self.bias = jnp.zeros((out_feats,), jnp.float32) if bias else None
        if residual:
            if in_feats != out_feats:
                std_r = gain * math.sqrt(2.0 / (in_feats + out_feats))
                self.res_weight = (std_r * jax.random.normal(
                    k_res, (out_feats, in_feats))).astype(jnp.float32)
            else:
                self.res_weight = "identity"
        else:
            self.res_weight = None

    def __call__(self, rowptr, colind, colptr, rowind, permute, feat, pseudo):
        # colptr / rowind / permute are consumed only by the *backward* pass of
        # the fused dgNN op; the forward pass needs only the CSR (rowptr, colind).
        n = feat.shape[0]
        # (N, K*F) flat — channel index k*F + f matches fc(feat).view(-1, K, F)
        node_feat = fc_linear(feat, self.fc_weight.T)
        w_exp = edge_gaussian_expanded(pseudo, self.mu, self.inv_sigma,
                                       self.out_feats)              # (E_pad, K*F)
        bias_2d = (self.bias if self.bias is not None
                   else jnp.zeros((self.out_feats,), jnp.float32))[None, :]
        rst = gmm_aggregate(rowptr, colind, w_exp, node_feat, bias_2d, n,
                            self.n_kernels, self.out_feats)
        if self.res_weight is not None:
            res = feat if isinstance(self.res_weight, str) \
                else fc_linear(feat, self.res_weight.T)
            rst = rst + res
        return rst


# ----------------------------------- main -------------------------------------
if __name__ == "__main__":
    key = jax.random.PRNGKey(0)
    N, in_feats, out_feats, dim, K, deg = 16, 32, 16, 2, 4, 4
    E = N * deg
    k_graph, k_pseudo, k_feat, k_param = jax.random.split(key, 4)

    # CSR graph: each destination node has `deg` incoming edges.
    colind = jax.random.randint(k_graph, (E,), 0, N, dtype=jnp.int32)
    rowptr = jnp.arange(0, E + 1, deg, dtype=jnp.int32)
    # CSC / permutation tensors (signature parity; unused in forward).
    permute = jnp.argsort(colind).astype(jnp.int32)
    rowind = jnp.repeat(jnp.arange(N, dtype=jnp.int32), deg)[permute]
    counts = jnp.bincount(colind, length=N).astype(jnp.int32)
    colptr = jnp.concatenate([jnp.zeros((1,), jnp.int32),
                              jnp.cumsum(counts).astype(jnp.int32)])

    feat = jax.random.normal(k_feat, (N, in_feats), dtype=jnp.float32)
    pseudo = jax.random.normal(k_pseudo, (E, dim), dtype=jnp.float32)

    conv = GMMConvPallas(in_feats, out_feats, dim, K, k_param)
    out = jax.block_until_ready(
        conv(rowptr, colind, colptr, rowind, permute, feat, pseudo))

    # pure-JAX reference for correctness
    nf_ref = (feat @ conv.fc_weight.T).reshape(N, K, out_feats)
    diff = pseudo[:, None, :] - conv.mu[None, :, :]
    w_ref = jnp.exp(-0.5 * jnp.sum((diff * conv.inv_sigma[None, :, :]) ** 2, -1))
    dst = jnp.repeat(jnp.arange(N), deg)
    msg = jnp.einsum("ek,ekf->ef", w_ref, nf_ref[colind])
    ref = jax.ops.segment_sum(msg, dst, num_segments=N) + conv.bias[None, :]

    assert out.shape == (N, out_feats)
    assert jnp.allclose(out, ref, atol=1e-4, rtol=1e-4), \
        float(jnp.max(jnp.abs(out - ref)))
    print("KERNEL_OK")
</pallas_src>

<mosaic_0001>
module attributes {stable_mosaic.version = 11 : i64} {
  func.func @_matmul_kernel(%arg0: i32, %arg1: i32, %arg2: i32, %arg3: memref<16x128xf32, #tpu.memory_space<vmem>>, %arg4: memref<128x128xf32, #tpu.memory_space<vmem>>, %arg5: memref<16x128xf32, #tpu.memory_space<vmem>>, %arg6: memref<16x128xf32, #tpu.memory_space<vmem>>) attributes {dimension_semantics = [#tpu.dimension_semantics<parallel>, #tpu.dimension_semantics<parallel>, #tpu.dimension_semantics<arbitrary>], iteration_bounds = array<i64: 1, 1, 1>, scalar_prefetch = 0 : i64, scratch_operands = 1 : i64, tpu.core_type = #tpu.core_type<tc>, window_params = [{transform_indices = @transform_0, window_bounds = array<i64: 16, 128>}, {transform_indices = @transform_1, window_bounds = array<i64: 128, 128>}, {transform_indices = @transform_2, window_bounds = array<i64: 16, 128>}]} {
    %c0_i32 = arith.constant 0 : i32
    %0 = arith.cmpi eq, %arg2, %c0_i32 : i32
    %1 = arith.extui %0 : i1 to i32
    %c0_i32_0 = arith.constant 0 : i32
    %2 = arith.cmpi ne, %1, %c0_i32_0 : i32
    scf.if %2 {
      %cst_10 = arith.constant 0.000000e+00 : f32
      %12 = vector.broadcast %cst_10 : f32 to vector<16x128xf32>
      %c0_11 = arith.constant 0 : index
      %c0_12 = arith.constant 0 : index
      %13 = vector.load %arg6[%c0_11, %c0_12] : memref<16x128xf32, #tpu.memory_space<vmem>>, vector<16x128xf32>
      tpu.vector_store %arg6[%c0_11, %c0_12], %12 {strides = array<i32>} : memref<16x128xf32, #tpu.memory_space<vmem>>, vector<16x128xf32>,
    } else {
    }
    %c0 = arith.constant 0 : index
    %c0_1 = arith.constant 0 : index
    %3 = vector.load %arg6[%c0, %c0_1] : memref<16x128xf32, #tpu.memory_space<vmem>>, vector<16x128xf32>
    %c0_2 = arith.constant 0 : index
    %c0_3 = arith.constant 0 : index
    %4 = vector.load %arg3[%c0_2, %c0_3] : memref<16x128xf32, #tpu.memory_space<vmem>>, vector<16x128xf32>
    %c0_4 = arith.constant 0 : index
    %c0_5 = arith.constant 0 : index
    %5 = vector.load %arg4[%c0_4, %c0_5] : memref<128x128xf32, #tpu.memory_space<vmem>>, vector<128x128xf32>
    %cst = arith.constant dense<0.000000e+00> : vector<16x128xf32>
    %6 = tpu.matmul %4, %5, %cst {dimension_numbers = #tpu.dot_dimension_numbers<[1], [0], [0], [1], [0, 0, 1, 1], [], []>} : vector<16x128xf32>, vector<128x128xf32>, vector<16x128xf32> -> vector<16x128xf32>
    %7 = arith.addf %3, %6 : vector<16x128xf32>
    %c0_6 = arith.constant 0 : index
    %c0_7 = arith.constant 0 : index
    %8 = vector.load %arg6[%c0_6, %c0_7] : memref<16x128xf32, #tpu.memory_space<vmem>>, vector<16x128xf32>
    tpu.vector_store %arg6[%c0_6, %c0_7], %7 {strides = array<i32>} : memref<16x128xf32, #tpu.memory_space<vmem>>, vector<16x128xf32>,
    %c0_i32_8 = arith.constant 0 : i32
    %9 = arith.cmpi eq, %arg2, %c0_i32_8 : i32
    %10 = arith.extui %9 : i1 to i32
    %c0_i32_9 = arith.constant 0 : i32
    %11 = arith.cmpi ne, %10, %c0_i32_9 : i32
    scf.if %11 {
      %c0_10 = arith.constant 0 : index
      %c0_11 = arith.constant 0 : index
      %12 = vector.load %arg6[%c0_10, %c0_11] : memref<16x128xf32, #tpu.memory_space<vmem>>, vector<16x128xf32>
      %c0_12 = arith.constant 0 : index
      %c0_13 = arith.constant 0 : index
      %13 = vector.load %arg5[%c0_12, %c0_13] : memref<16x128xf32, #tpu.memory_space<vmem>>, vector<16x128xf32>
      tpu.vector_store %arg5[%c0_12, %c0_13], %12 {strides = array<i32>} : memref<16x128xf32, #tpu.memory_space<vmem>>, vector<16x128xf32>,
    } else {
    }
    return
  }
  func.func @transform_0(%arg0: i32, %arg1: i32, %arg2: i32) -> (i32, i32) {
    %c0_i32 = arith.constant 0 : i32
    return %arg0, %arg2 : i32, i32
  }
  func.func @transform_1(%arg0: i32, %arg1: i32, %arg2: i32) -> (i32, i32) {
    %c0_i32 = arith.constant 0 : i32
    return %arg2, %arg1 : i32, i32
  }
  func.func @transform_2(%arg0: i32, %arg1: i32, %arg2: i32) -> (i32, i32) {
    %c0_i32 = arith.constant 0 : i32
    return %arg0, %arg1 : i32, i32
  }
}

</mosaic_0001>

<bundles_post_ra>
// kernel: tpu_custom_call.1
= control target key start
LH: loop header
LB: loop body
LE: loop exit
PB: predicated region body
PF: predicated region fallthrough
CT: control target
= control target key end

     0   :  { %7 = vsyncpa [#allocation4], 0  ;;  %s261_s0 = inlined_call_operand.hbm [shape: f32[16,128], index: 0, kind: input, shape index: {}]   ;;  %s262_s1 = inlined_call_operand.hbm [shape: f32[128,128], index: 1, kind: input, shape index: {}]   ;;  %s263_s2 = inlined_call_operand.hbm [shape: f32[16,128], index: 2, kind: output, shape index: {}]  }
   0x1   :  { %8 = vsyncpa [#allocation7], 0 }
   0x2   :  { %9 = vsyncpa [#allocation5], 0  ;;  %s14_s11 = sshll.u32 %s261_s0, 4  ;;  %s223_s12 = smov [#allocation3]   ;;  %s15_s11 = int_to_ptr.hbm [resolvable:$true] %s14_s11 }
   0x3   :  { %s16_s13 = sshll.u32 %s223_s12, 4  ;;  %s27_s16 = sshll.u32 %s262_s1, 4  ;;  %s17_s13 = int_to_ptr.vmem [resolvable:$true] %s16_s13  ;;  %s28_s16 = int_to_ptr.hbm [resolvable:$true] %s27_s16 }
   0x4   :  { %s224_s17 = smov 128   ;;  %s225_s18 = smov 8  }
   0x5   :  { %22 = dma.hbm_to_vmem [thread:$0]  %s15_s11, 256, %s17_s13, [#allocation4], %s224_s17, %s224_s17, %s225_s18  }
   0x6   :  { %s226_s19 = smov [#allocation6]  }
   0x7   :  { %s29_s20 = sshll.u32 %s226_s19, 4  ;;  %s30_s20 = int_to_ptr.vmem [resolvable:$true] %s29_s20 }
   0x8   :  { %35 = dma.hbm_to_vmem [thread:$0]  %s28_s16, 2048, %s30_s20, [#allocation7], %s224_s17, %s224_s17, %s225_s18  }
   0x9   :  { %217 = dma.done.wait [#allocation4], 256  }
   0xa   :  { %218 = vsyncadd [#allocation4], 4294967040 }
   0xb   :  { %219 = dma.done.wait [#allocation7], 2048  }
   0xc   :  { %220 = vsyncadd [#allocation7], 4294965248  ;;  %v69_v0 = vld [vmem:[#allocation6 + $0x78] sm:$0xff]  ;;  %v68_v1 = vld [vmem:[#allocation6 + $0x70] sm:$0xff]  ;;  %s227_s0 = smov [#allocation8]   ;;  %s110_s23 = sshll.u32 %s263_s2, 4  ;;  %s111_s23 = int_to_ptr.hbm [resolvable:$true] %s110_s23 }
   0xd   :  { %70 = vmatpush.msra.mxu0 %v69_v0  ;;  %124 = vmatpush.msra.mxu1 %v69_v0  ;;  %v67_v2 = vld [vmem:[#allocation6 + $0x68] sm:$0xff]  ;;  %v66_v3 = vld [vmem:[#allocation6 + $0x60] sm:$0xff]  ;;  %v65_v4 = vld [vmem:[#allocation6 + $0x58] sm:$0xff]  ;;  %s108_s1 = sshll.u32 %s227_s0, 4  ;;  %s109_s1 = int_to_ptr.vmem [resolvable:$true] %s108_s1 }
   0xe   :  { %v64_v5 = vld [vmem:[#allocation6 + $0x50] sm:$0xff]  ;;  %v63_v6 = vld [vmem:[#allocation6 + $0x48] sm:$0xff]  ;;  %v62_v7 = vld [vmem:[#allocation6 + $0x40] sm:$0xff] }
   0xf   :  { %71 = vmatpush.msra.mxu0 %v68_v1  ;;  %125 = vmatpush.msra.mxu1 %v68_v1  ;;  %v61_v8 = vld [vmem:[#allocation6 + $0x38] sm:$0xff]  ;;  %v60_v9 = vld [vmem:[#allocation6 + $0x30] sm:$0xff]  ;;  %v59_v10 = vld [vmem:[#allocation6 + $0x28] sm:$0xff] }
  0x10   :  { %v58_v11 = vld [vmem:[#allocation6 + $0x20] sm:$0xff]  ;;  %v57_v12 = vld [vmem:[#allocation6 + $0x18] sm:$0xff]  ;;  %v56_v13 = vld [vmem:[#allocation6 + $0x10] sm:$0xff] }
  0x11   :  { %72 = vmatpush.msra.mxu0 %v67_v2  ;;  %126 = vmatpush.msra.mxu1 %v67_v2  ;;  %v55_v14 = vld [vmem:[#allocation6 + $0x8] sm:$0xff]  ;;  %v54_v15 = vld [vmem:[#allocation6] sm:$0xff]  ;;  %v52_v16 = vld [vmem:[#allocation3] sm:$0xff] }
  0x12   :  { %v53_v17 = vld [vmem:[#allocation3 + $0x8] sm:$0xff] }
  0x13   :  { %73 = vmatpush.msra.mxu0 %v66_v3  ;;  %127 = vmatpush.msra.mxu1 %v66_v3 }
  0x15   :  { %74 = vmatpush.msra.mxu0 %v65_v4  ;;  %128 = vmatpush.msra.mxu1 %v65_v4 }
  0x17   :  { %75 = vmatpush.msra.mxu0 %v64_v5  ;;  %129 = vmatpush.msra.mxu1 %v64_v5 }
  0x19   :  { %76 = vmatpush.msra.mxu0 %v63_v6  ;;  %130 = vmatpush.msra.mxu1 %v63_v6 }
  0x1b   :  { %77 = vmatpush.msra.mxu0 %v62_v7  ;;  %131 = vmatpush.msra.mxu1 %v62_v7 }
  0x1d   :  { %78 = vmatpush.msra.mxu0 %v61_v8  ;;  %132 = vmatpush.msra.mxu1 %v61_v8 }
  0x1f   :  { %79 = vmatpush.msra.mxu0 %v60_v9  ;;  %133 = vmatpush.msra.mxu1 %v60_v9 }
  0x21   :  { %80 = vmatpush.msra.mxu0 %v59_v10  ;;  %134 = vmatpush.msra.mxu1 %v59_v10 }
  0x23   :  { %81 = vmatpush.msra.mxu0 %v58_v11  ;;  %135 = vmatpush.msra.mxu1 %v58_v11 }
  0x25   :  { %82 = vmatpush.msra.mxu0 %v57_v12  ;;  %136 = vmatpush.msra.mxu1 %v57_v12 }
  0x27   :  { %83 = vmatpush.msra.mxu0 %v56_v13  ;;  %137 = vmatpush.msra.mxu1 %v56_v13 }
  0x29   :  { %84 = vmatpush.msra.mxu0 %v55_v14  ;;  %138 = vmatpush.msra.mxu1 %v55_v14 }
  0x2b   :  { %85 = vmatpush.msra.mxu0 %v54_v15  ;;  %139 = vmatpush.msra.mxu1 %v54_v15 }
  0x2c   :  { %86 = vmatmul.f32.vlgmr.msra.gmra.mxu0 %v52_v16  ;;  %89 = vmatmul.f32.vlgmr.msra.gmra.mxu1 %v53_v17 }
  0xa9   :  { %v87_v18 = vpop.f32.mrf.mxu0  ;;  %v90_v19 = vpop.f32.mrf.mxu1 }
  0xaa   :  { %102 = vst [vmem:[#allocation8] sm:$0xff] %v87_v18 }
  0xab   :  { %103 = vst [vmem:[#allocation8 + $0x8] sm:$0xff] %v90_v19 }
  0xac   :  { %116 = dma.vmem_to_hbm [thread:$0]  %s109_s1, 256, %s111_s23, [#allocation5], %s224_s17, %s224_s17, %s225_s18  }
  0xad   :  { %221 = dma.done.wait [#allocation5], 256  }
  0xae   :  { %222 = vsyncadd [#allocation5], 4294967040 }
  0xaf   :  { %121 = vsyncpa [#allocation4], 1 }
  0xb0   :  { %122 = vsyncpa [#allocation7], 1 }
  0xb1   :  { %123 = vsyncpa [#allocation5], 1 }

</bundles_post_ra>
